<compile_context>
chip_gen: v5e
topology: v5e:2x2
jax: 0.10.0
libtpu: 0.0.40
codegen_flags: <defaults>
</compile_context>

<pallas_src>
import jax
import jax.numpy as jnp
from jax.experimental import pallas as pl
from jax.experimental.pallas import tpu as pltpu

HIDDEN = 10        # hidden_size in the PyTorch module
VOCAB = 32         # input_size (vocab size) -- defined outside the module; pick small
P_DROPOUT = 0.3    # p_dropout in the PyTorch module
SEQ_LEN = 8        # example sequence length for the fused-sequence path


def _encoder_kernel(tok_ref,     # (T,) int32 token ids            SMEM
                    emb_ref,     # (V, 1, H) embedding table       VMEM (resident)
                    keep_ref,    # (T, 1, H) dropout keep masks    VMEM
                    wi_ref,      # (H, 3H)   W_ih^T                VMEM
                    wh_ref,      # (H, 3H)   W_hh^T                VMEM
                    bi_ref,      # (1, 3H)   b_ih                  VMEM
                    bh_ref,      # (1, 3H)   b_hh                  VMEM
                    h0_ref,      # (1, H)    initial hidden state  VMEM
                    out_ref):    # (T, 1, H) per-step GRU outputs  VMEM
    H = h0_ref.shape[-1]
    T = out_ref.shape[0]

    # Loop-invariant weights / biases: load once into vregs before the loop.
    wi = wi_ref[...]
    wh = wh_ref[...]
    bi = bi_ref[...]
    bh = bh_ref[...]

    def step(t, h):
        tok = tok_ref[t]                              # scalar read from SMEM
        x = emb_ref[tok] * keep_ref[t]                # (1, H) embedding row + dropout
        # Fused GRU gates (PyTorch order r, z, n):
        gi = jnp.dot(x, wi, preferred_element_type=jnp.float32) + bi   # (1, 3H)
        gh = jnp.dot(h, wh, preferred_element_type=jnp.float32) + bh   # (1, 3H)
        rz = jax.nn.sigmoid(gi[:, :2 * H] + gh[:, :2 * H])             # r and z in one shot
        r, z = rz[:, :H], rz[:, H:2 * H]
        n = jnp.tanh(gi[:, 2 * H:] + r * gh[:, 2 * H:])
        h_new = (1.0 - z) * n + z * h                                  # (1, H)
        out_ref[t] = h_new.astype(out_ref.dtype)      # dynamic leading-axis store
        return h_new

    # Short static trip count -> unrolled for LLO scheduler visibility.
    jax.lax.fori_loop(0, T, step, h0_ref[...], unroll=True)


def encoder_forward_sequence(params, tokens, hidden, *, dropout_key=None, train=False):
    """Run T Encoder steps in a single fused pallas_call.

    tokens : (T,) int32 token ids
    hidden : (1, 1, H) initial hidden state
    returns (output, hidden): output (1, T, H) batch_first, hidden (1, 1, H).
    """
    H = HIDDEN
    tokens = jnp.asarray(tokens, jnp.int32).reshape(-1)
    T = int(tokens.shape[0])

    emb = params["embedding"].astype(jnp.float32).reshape(-1, 1, H)   # (V, 1, H)
    wi_t = params["w_ih"].astype(jnp.float32).T                       # (H, 3H)
    wh_t = params["w_hh"].astype(jnp.float32).T                       # (H, 3H)
    bi = params["b_ih"].astype(jnp.float32).reshape(1, 3 * H)
    bh = params["b_hh"].astype(jnp.float32).reshape(1, 3 * H)
    h0 = hidden.reshape(1, H).astype(jnp.float32)

    # Training-mode inverted dropout mask (deterministic given dropout_key);
    # eval mode is identity.  Generated host-side, applied inside the kernel.
    if train and dropout_key is not None:
        keep = jax.random.bernoulli(dropout_key, 1.0 - P_DROPOUT, (T, 1, H))
        keep = keep.astype(jnp.float32) / jnp.float32(1.0 - P_DROPOUT)
    else:
        keep = jnp.ones((T, 1, H), jnp.float32)

    vmem = pl.BlockSpec(memory_space=pltpu.MemorySpace.VMEM)
    out_seq = pl.pallas_call(
        _encoder_kernel,
        out_shape=jax.ShapeDtypeStruct((T, 1, H), jnp.float32),
        in_specs=[
            pl.BlockSpec(memory_space=pltpu.MemorySpace.SMEM),  # token ids
            vmem,   # embedding table
            vmem,   # dropout keep masks
            vmem,   # W_ih^T
            vmem,   # W_hh^T
            vmem,   # b_ih
            vmem,   # b_hh
            vmem,   # h0
        ],
        out_specs=pl.BlockSpec(memory_space=pltpu.MemorySpace.VMEM),
    )(tokens, emb, keep, wi_t, wh_t, bi, bh, h0)

    output = out_seq.reshape(1, T, H)                # batch_first GRU output
    hidden_out = out_seq[T - 1].reshape(1, 1, H)     # final hidden state
    return output, hidden_out


def encoder_forward(params, token, hidden, *, dropout_key=None, train=False):
    """Single-step call matching Encoder.forward(input, hidden) exactly."""
    tokens = jnp.asarray(token, jnp.int32).reshape(1)
    output, hidden_out = encoder_forward_sequence(
        params, tokens, hidden, dropout_key=dropout_key, train=train)
    return output.reshape(1, 1, HIDDEN), hidden_out


def ref_forward_sequence(params, tokens, hidden):
    """Pure-JAX reference (eval-mode dropout = identity)."""
    H = HIDDEN
    hi = jax.lax.Precision.HIGHEST
    h = hidden.reshape(1, H).astype(jnp.float32)
    outs = []
    for tok in list(jnp.asarray(tokens).reshape(-1)):
        x = params["embedding"][tok].reshape(1, H)
        gi = jnp.dot(x, params["w_ih"].T, precision=hi) + params["b_ih"]
        gh = jnp.dot(h, params["w_hh"].T, precision=hi) + params["b_hh"]
        i_r, i_z, i_n = jnp.split(gi, 3, axis=1)
        h_r, h_z, h_n = jnp.split(gh, 3, axis=1)
        r = jax.nn.sigmoid(i_r + h_r)
        z = jax.nn.sigmoid(i_z + h_z)
        n = jnp.tanh(i_n + r * h_n)
        h = (1.0 - z) * n + z * h
        outs.append(h)
    output = jnp.stack(outs, axis=0).reshape(1, len(outs), H)
    return output, h.reshape(1, 1, H)


if __name__ == "__main__":
    key = jax.random.PRNGKey(0)
    k1, k2, k3, k4, k5, k_tok, k_drop = jax.random.split(key, 7)
    bound = 1.0 / (HIDDEN ** 0.5)
    params = {
        "embedding": jax.random.normal(k1, (VOCAB, HIDDEN), jnp.float32),
        "w_ih": jax.random.uniform(k2, (3 * HIDDEN, HIDDEN), jnp.float32, -bound, bound),
        "w_hh": jax.random.uniform(k3, (3 * HIDDEN, HIDDEN), jnp.float32, -bound, bound),
        "b_ih": jax.random.uniform(k4, (3 * HIDDEN,), jnp.float32, -bound, bound),
        "b_hh": jax.random.uniform(k5, (3 * HIDDEN,), jnp.float32, -bound, bound),
    }

    tokens = jax.random.randint(k_tok, (SEQ_LEN,), 0, VOCAB, dtype=jnp.int32)
    hidden0 = jnp.zeros((1, 1, HIDDEN), jnp.float32)   # Encoder.initHidden()

    # Training mode (deterministic dropout mask, applied in-kernel).
    out_tr, hid_tr = encoder_forward_sequence(
        params, tokens, hidden0, dropout_key=k_drop, train=True)
    jax.block_until_ready((out_tr, hid_tr))

    # Eval mode: fused-sequence kernel vs pure-JAX GRU reference.
    out_ev, hid_ev = encoder_forward_sequence(params, tokens, hidden0, train=False)
    jax.block_until_ready((out_ev, hid_ev))
    ref_out, ref_hid = ref_forward_sequence(params, tokens, hidden0)
    assert out_ev.shape == (1, SEQ_LEN, HIDDEN) and hid_ev.shape == (1, 1, HIDDEN)
    assert jnp.allclose(out_ev, ref_out, atol=2e-4, rtol=2e-4), "sequence output mismatch"
    assert jnp.allclose(hid_ev, ref_hid, atol=2e-4, rtol=2e-4), "sequence hidden mismatch"

    # Single-step call matching the nn.Module forward signature (T = 1).
    out1, hid1 = encoder_forward(params, int(tokens[0]), hidden0, train=False)
    jax.block_until_ready((out1, hid1))
    ref_out1, ref_hid1 = ref_forward_sequence(params, tokens[:1], hidden0)
    assert out1.shape == (1, 1, HIDDEN) and hid1.shape == (1, 1, HIDDEN)
    assert jnp.allclose(out1, ref_out1.reshape(1, 1, HIDDEN), atol=2e-4, rtol=2e-4)
    assert jnp.allclose(hid1, ref_hid1, atol=2e-4, rtol=2e-4)

    print("KERNEL_OK")
</pallas_src>

<mosaic_0001>
module attributes {stable_mosaic.version = 11 : i64} {
  func.func @_encoder_kernel(%arg0: memref<8xi32, #tpu.memory_space<smem>>, %arg1: memref<32x1x10xf32, #tpu.memory_space<vmem>>, %arg2: memref<8x1x10xf32, #tpu.memory_space<vmem>>, %arg3: memref<10x30xf32, #tpu.memory_space<vmem>>, %arg4: memref<10x30xf32, #tpu.memory_space<vmem>>, %arg5: memref<1x30xf32, #tpu.memory_space<vmem>>, %arg6: memref<1x30xf32, #tpu.memory_space<vmem>>, %arg7: memref<1x10xf32, #tpu.memory_space<vmem>>, %arg8: memref<8x1x10xf32, #tpu.memory_space<vmem>>) attributes {dimension_semantics = [], scalar_prefetch = 0 : i64, scratch_operands = 0 : i64, tpu.core_type = #tpu.core_type<tc>} {
    %c0 = arith.constant 0 : index
    %c0_0 = arith.constant 0 : index
    %0 = vector.load %arg3[%c0, %c0_0] : memref<10x30xf32, #tpu.memory_space<vmem>>, vector<10x30xf32>
    %c0_1 = arith.constant 0 : index
    %c0_2 = arith.constant 0 : index
    %1 = vector.load %arg4[%c0_1, %c0_2] : memref<10x30xf32, #tpu.memory_space<vmem>>, vector<10x30xf32>
    %c0_3 = arith.constant 0 : index
    %c0_4 = arith.constant 0 : index
    %2 = vector.load %arg5[%c0_3, %c0_4] : memref<1x30xf32, #tpu.memory_space<vmem>>, vector<1x30xf32>
    %c0_5 = arith.constant 0 : index
    %c0_6 = arith.constant 0 : index
    %3 = vector.load %arg6[%c0_5, %c0_6] : memref<1x30xf32, #tpu.memory_space<vmem>>, vector<1x30xf32>
    %c0_7 = arith.constant 0 : index
    %c0_8 = arith.constant 0 : index
    %4 = vector.load %arg7[%c0_7, %c0_8] : memref<1x10xf32, #tpu.memory_space<vmem>>, vector<1x10xf32>
    %c0_i32 = arith.constant 0 : i32
    %5 = arith.index_cast %c0_i32 : i32 to index
    %6 = memref.load %arg0[%5] : memref<8xi32, #tpu.memory_space<smem>>
    %7 = arith.index_cast %6 : i32 to index
    %c0_9 = arith.constant 0 : index
    %c0_10 = arith.constant 0 : index
    %8 = vector.load %arg1[%7, %c0_9, %c0_10] : memref<32x1x10xf32, #tpu.memory_space<vmem>>, vector<1x1x10xf32>
    %9 = vector.shape_cast %8 : vector<1x1x10xf32> to vector<1x10xf32>
    %10 = arith.index_cast %c0_i32 : i32 to index
    %c0_11 = arith.constant 0 : index
    %c0_12 = arith.constant 0 : index
    %11 = vector.load %arg2[%10, %c0_11, %c0_12] : memref<8x1x10xf32, #tpu.memory_space<vmem>>, vector<1x1x10xf32>
    %12 = vector.shape_cast %11 : vector<1x1x10xf32> to vector<1x10xf32>
    %13 = arith.mulf %9, %12 : vector<1x10xf32>
    %cst = arith.constant dense<0.000000e+00> : vector<1x30xf32>
    %14 = tpu.matmul %13, %0, %cst {dimension_numbers = #tpu.dot_dimension_numbers<[1], [0], [0], [1], [0, 0, 1, 1], [], []>} : vector<1x10xf32>, vector<10x30xf32>, vector<1x30xf32> -> vector<1x30xf32>
    %15 = arith.addf %14, %2 : vector<1x30xf32>
    %cst_13 = arith.constant dense<0.000000e+00> : vector<1x30xf32>
    %16 = tpu.matmul %4, %1, %cst_13 {dimension_numbers = #tpu.dot_dimension_numbers<[1], [0], [0], [1], [0, 0, 1, 1], [], []>} : vector<1x10xf32>, vector<10x30xf32>, vector<1x30xf32> -> vector<1x30xf32>
    %17 = arith.addf %16, %3 : vector<1x30xf32>
    %18 = vector.extract_strided_slice %15 {offsets = [0, 0], sizes = [1, 20], strides = [1, 1]} : vector<1x30xf32> to vector<1x20xf32>
    %19 = vector.extract_strided_slice %17 {offsets = [0, 0], sizes = [1, 20], strides = [1, 1]} : vector<1x30xf32> to vector<1x20xf32>
    %20 = arith.addf %18, %19 : vector<1x20xf32>
    %21 = arith.negf %20 : vector<1x20xf32>
    %22 = math.exp %21 : vector<1x20xf32>
    %cst_14 = arith.constant 1.000000e+00 : f32
    %23 = vector.broadcast %cst_14 : f32 to vector<1x20xf32>
    %24 = arith.addf %23, %22 : vector<1x20xf32>
    %25 = arith.divf %23, %24 : vector<1x20xf32>
    %26 = vector.extract_strided_slice %25 {offsets = [0, 0], sizes = [1, 10], strides = [1, 1]} : vector<1x20xf32> to vector<1x10xf32>
    %27 = vector.extract_strided_slice %25 {offsets = [0, 10], sizes = [1, 10], strides = [1, 1]} : vector<1x20xf32> to vector<1x10xf32>
    %28 = vector.extract_strided_slice %15 {offsets = [0, 20], sizes = [1, 10], strides = [1, 1]} : vector<1x30xf32> to vector<1x10xf32>
    %29 = vector.extract_strided_slice %17 {offsets = [0, 20], sizes = [1, 10], strides = [1, 1]} : vector<1x30xf32> to vector<1x10xf32>
    %30 = arith.mulf %26, %29 : vector<1x10xf32>
    %31 = arith.addf %28, %30 : vector<1x10xf32>
    %32 = math.tanh %31 : vector<1x10xf32>
    %cst_15 = arith.constant 1.000000e+00 : f32
    %33 = vector.broadcast %cst_15 : f32 to vector<1x10xf32>
    %34 = arith.subf %33, %27 : vector<1x10xf32>
    %35 = arith.mulf %34, %32 : vector<1x10xf32>
    %36 = arith.mulf %27, %4 : vector<1x10xf32>
    %37 = arith.addf %35, %36 : vector<1x10xf32>
    %38 = arith.index_cast %c0_i32 : i32 to index
    %c0_16 = arith.constant 0 : index
    %c0_17 = arith.constant 0 : index
    %39 = vector.load %arg8[%38, %c0_16, %c0_17] : memref<8x1x10xf32, #tpu.memory_space<vmem>>, vector<1x1x10xf32>
    %40 = vector.shape_cast %39 : vector<1x1x10xf32> to vector<1x10xf32>
    %41 = vector.shape_cast %37 : vector<1x10xf32> to vector<1x1x10xf32>
    tpu.vector_store %arg8[%38, %c0_16, %c0_17], %41 {strides = array<i32>} : memref<8x1x10xf32, #tpu.memory_space<vmem>>, vector<1x1x10xf32>,
    %c1_i32 = arith.constant 1 : i32
    %42 = arith.index_cast %c1_i32 : i32 to index
    %43 = memref.load %arg0[%42] : memref<8xi32, #tpu.memory_space<smem>>
    %44 = arith.index_cast %43 : i32 to index
    %c0_18 = arith.constant 0 : index
    %c0_19 = arith.constant 0 : index
    %45 = vector.load %arg1[%44, %c0_18, %c0_19] : memref<32x1x10xf32, #tpu.memory_space<vmem>>, vector<1x1x10xf32>
    %46 = vector.shape_cast %45 : vector<1x1x10xf32> to vector<1x10xf32>
    %47 = arith.index_cast %c1_i32 : i32 to index
    %c0_20 = arith.constant 0 : index
    %c0_21 = arith.constant 0 : index
    %48 = vector.load %arg2[%47, %c0_20, %c0_21] : memref<8x1x10xf32, #tpu.memory_space<vmem>>, vector<1x1x10xf32>
    %49 = vector.shape_cast %48 : vector<1x1x10xf32> to vector<1x10xf32>
    %50 = arith.mulf %46, %49 : vector<1x10xf32>
    %cst_22 = arith.constant dense<0.000000e+00> : vector<1x30xf32>
    %51 = tpu.matmul %50, %0, %cst_22 {dimension_numbers = #tpu.dot_dimension_numbers<[1], [0], [0], [1], [0, 0, 1, 1], [], []>} : vector<1x10xf32>, vector<10x30xf32>, vector<1x30xf32> -> vector<1x30xf32>
    %52 = arith.addf %51, %2 : vector<1x30xf32>
    %cst_23 = arith.constant dense<0.000000e+00> : vector<1x30xf32>
    %53 = tpu.matmul %37, %1, %cst_23 {dimension_numbers = #tpu.dot_dimension_numbers<[1], [0], [0], [1], [0, 0, 1, 1], [], []>} : vector<1x10xf32>, vector<10x30xf32>, vector<1x30xf32> -> vector<1x30xf32>
    %54 = arith.addf %53, %3 : vector<1x30xf32>
    %55 = vector.extract_strided_slice %52 {offsets = [0, 0], sizes = [1, 20], strides = [1, 1]} : vector<1x30xf32> to vector<1x20xf32>
    %56 = vector.extract_strided_slice %54 {offsets = [0, 0], sizes = [1, 20], strides = [1, 1]} : vector<1x30xf32> to vector<1x20xf32>
    %57 = arith.addf %55, %56 : vector<1x20xf32>
    %58 = arith.negf %57 : vector<1x20xf32>
    %59 = math.exp %58 : vector<1x20xf32>
    %cst_24 = arith.constant 1.000000e+00 : f32
    %60 = vector.broadcast %cst_24 : f32 to vector<1x20xf32>
    %61 = arith.addf %60, %59 : vector<1x20xf32>
    %62 = arith.divf %60, %61 : vector<1x20xf32>
    %63 = vector.extract_strided_slice %62 {offsets = [0, 0], sizes = [1, 10], strides = [1, 1]} : vector<1x20xf32> to vector<1x10xf32>
    %64 = vector.extract_strided_slice %62 {offsets = [0, 10], sizes = [1, 10], strides = [1, 1]} : vector<1x20xf32> to vector<1x10xf32>
    %65 = vector.extract_strided_slice %52 {offsets = [0, 20], sizes = [1, 10], strides = [1, 1]} : vector<1x30xf32> to vector<1x10xf32>
    %66 = vector.extract_strided_slice %54 {offsets = [0, 20], sizes = [1, 10], strides = [1, 1]} : vector<1x30xf32> to vector<1x10xf32>
    %67 = arith.mulf %63, %66 : vector<1x10xf32>
    %68 = arith.addf %65, %67 : vector<1x10xf32>
    %69 = math.tanh %68 : vector<1x10xf32>
    %cst_25 = arith.constant 1.000000e+00 : f32
    %70 = vector.broadcast %cst_25 : f32 to vector<1x10xf32>
    %71 = arith.subf %70, %64 : vector<1x10xf32>
    %72 = arith.mulf %71, %69 : vector<1x10xf32>
    %73 = arith.mulf %64, %37 : vector<1x10xf32>
    %74 = arith.addf %72, %73 : vector<1x10xf32>
    %75 = arith.index_cast %c1_i32 : i32 to index
    %c0_26 = arith.constant 0 : index
    %c0_27 = arith.constant 0 : index
    %76 = vector.load %arg8[%75, %c0_26, %c0_27] : memref<8x1x10xf32, #tpu.memory_space<vmem>>, vector<1x1x10xf32>
    %77 = vector.shape_cast %76 : vector<1x1x10xf32> to vector<1x10xf32>
    %78 = vector.shape_cast %74 : vector<1x10xf32> to vector<1x1x10xf32>
    tpu.vector_store %arg8[%75, %c0_26, %c0_27], %78 {strides = array<i32>} : memref<8x1x10xf32, #tpu.memory_space<vmem>>, vector<1x1x10xf32>,
    %c2_i32 = arith.constant 2 : i32
    %79 = arith.index_cast %c2_i32 : i32 to index
    %80 = memref.load %arg0[%79] : memref<8xi32, #tpu.memory_space<smem>>
    %81 = arith.index_cast %80 : i32 to index
    %c0_28 = arith.constant 0 : index
    %c0_29 = arith.constant 0 : index
    %82 = vector.load %arg1[%81, %c0_28, %c0_29] : memref<32x1x10xf32, #tpu.memory_space<vmem>>, vector<1x1x10xf32>
    %83 = vector.shape_cast %82 : vector<1x1x10xf32> to vector<1x10xf32>
    %84 = arith.index_cast %c2_i32 : i32 to index
    %c0_30 = arith.constant 0 : index
    %c0_31 = arith.constant 0 : index
    %85 = vector.load %arg2[%84, %c0_30, %c0_31] : memref<8x1x10xf32, #tpu.memory_space<vmem>>, vector<1x1x10xf32>
    %86 = vector.shape_cast %85 : vector<1x1x10xf32> to vector<1x10xf32>
    %87 = arith.mulf %83, %86 : vector<1x10xf32>
    %cst_32 = arith.constant dense<0.000000e+00> : vector<1x30xf32>
    %88 = tpu.matmul %87, %0, %cst_32 {dimension_numbers = #tpu.dot_dimension_numbers<[1], [0], [0], [1], [0, 0, 1, 1], [], []>} : vector<1x10xf32>, vector<10x30xf32>, vector<1x30xf32> -> vector<1x30xf32>
    %89 = arith.addf %88, %2 : vector<1x30xf32>
    %cst_33 = arith.constant dense<0.000000e+00> : vector<1x30xf32>
    %90 = tpu.matmul %74, %1, %cst_33 {dimension_numbers = #tpu.dot_dimension_numbers<[1], [0], [0], [1], [0, 0, 1, 1], [], []>} : vector<1x10xf32>, vector<10x30xf32>, vector<1x30xf32> -> vector<1x30xf32>
    %91 = arith.addf %90, %3 : vector<1x30xf32>
    %92 = vector.extract_strided_slice %89 {offsets = [0, 0], sizes = [1, 20], strides = [1, 1]} : vector<1x30xf32> to vector<1x20xf32>
    %93 = vector.extract_strided_slice %91 {offsets = [0, 0], sizes = [1, 20], strides = [1, 1]} : vector<1x30xf32> to vector<1x20xf32>
    %94 = arith.addf %92, %93 : vector<1x20xf32>
    %95 = arith.negf %94 : vector<1x20xf32>
    %96 = math.exp %95 : vector<1x20xf32>
    %cst_34 = arith.constant 1.000000e+00 : f32
    %97 = vector.broadcast %cst_34 : f32 to vector<1x20xf32>
    %98 = arith.addf %97, %96 : vector<1x20xf32>
    %99 = arith.divf %97, %98 : vector<1x20xf32>
    %100 = vector.extract_strided_slice %99 {offsets = [0, 0], sizes = [1, 10], strides = [1, 1]} : vector<1x20xf32> to vector<1x10xf32>
    %101 = vector.extract_strided_slice %99 {offsets = [0, 10], sizes = [1, 10], strides = [1, 1]} : vector<1x20xf32> to vector<1x10xf32>
    %102 = vector.extract_strided_slice %89 {offsets = [0, 20], sizes = [1, 10], strides = [1, 1]} : vector<1x30xf32> to vector<1x10xf32>
    %103 = vector.extract_strided_slice %91 {offsets = [0, 20], sizes = [1, 10], strides = [1, 1]} : vector<1x30xf32> to vector<1x10xf32>
    %104 = arith.mulf %100, %103 : vector<1x10xf32>
    %105 = arith.addf %102, %104 : vector<1x10xf32>
    %106 = math.tanh %105 : vector<1x10xf32>
    %cst_35 = arith.constant 1.000000e+00 : f32
    %107 = vector.broadcast %cst_35 : f32 to vector<1x10xf32>
    %108 = arith.subf %107, %101 : vector<1x10xf32>
    %109 = arith.mulf %108, %106 : vector<1x10xf32>
    %110 = arith.mulf %101, %74 : vector<1x10xf32>
    %111 = arith.addf %109, %110 : vector<1x10xf32>
    %112 = arith.index_cast %c2_i32 : i32 to index
    %c0_36 = arith.constant 0 : index
    %c0_37 = arith.constant 0 : index
    %113 = vector.load %arg8[%112, %c0_36, %c0_37] : memref<8x1x10xf32, #tpu.memory_space<vmem>>, vector<1x1x10xf32>
    %114 = vector.shape_cast %113 : vector<1x1x10xf32> to vector<1x10xf32>
    %115 = vector.shape_cast %111 : vector<1x10xf32> to vector<1x1x10xf32>
    tpu.vector_store %arg8[%112, %c0_36, %c0_37], %115 {strides = array<i32>} : memref<8x1x10xf32, #tpu.memory_space<vmem>>, vector<1x1x10xf32>,
    %c3_i32 = arith.constant 3 : i32
    %116 = arith.index_cast %c3_i32 : i32 to index
    %117 = memref.load %arg0[%116] : memref<8xi32, #tpu.memory_space<smem>>
    %118 = arith.index_cast %117 : i32 to index
    %c0_38 = arith.constant 0 : index
    %c0_39 = arith.constant 0 : index
    %119 = vector.load %arg1[%118, %c0_38, %c0_39] : memref<32x1x10xf32, #tpu.memory_space<vmem>>, vector<1x1x10xf32>
    %120 = vector.shape_cast %119 : vector<1x1x10xf32> to vector<1x10xf32>
    %121 = arith.index_cast %c3_i32 : i32 to index
    %c0_40 = arith.constant 0 : index
    %c0_41 = arith.constant 0 : index
    %122 = vector.load %arg2[%121, %c0_40, %c0_41] : memref<8x1x10xf32, #tpu.memory_space<vmem>>, vector<1x1x10xf32>
    %123 = vector.shape_cast %122 : vector<1x1x10xf32> to vector<1x10xf32>
    %124 = arith.mulf %120, %123 : vector<1x10xf32>
    %cst_42 = arith.constant dense<0.000000e+00> : vector<1x30xf32>
    %125 = tpu.matmul %124, %0, %cst_42 {dimension_numbers = #tpu.dot_dimension_numbers<[1], [0], [0], [1], [0, 0, 1, 1], [], []>} : vector<1x10xf32>, vector<10x30xf32>, vector<1x30xf32> -> vector<1x30xf32>
    %126 = arith.addf %125, %2 : vector<1x30xf32>
    %cst_43 = arith.constant dense<0.000000e+00> : vector<1x30xf32>
    %127 = tpu.matmul %111, %1, %cst_43 {dimension_numbers = #tpu.dot_dimension_numbers<[1], [0], [0], [1], [0, 0, 1, 1], [], []>} : vector<1x10xf32>, vector<10x30xf32>, vector<1x30xf32> -> vector<1x30xf32>
    %128 = arith.addf %127, %3 : vector<1x30xf32>
    %129 = vector.extract_strided_slice %126 {offsets = [0, 0], sizes = [1, 20], strides = [1, 1]} : vector<1x30xf32> to vector<1x20xf32>
    %130 = vector.extract_strided_slice %128 {offsets = [0, 0], sizes = [1, 20], strides = [1, 1]} : vector<1x30xf32> to vector<1x20xf32>
    %131 = arith.addf %129, %130 : vector<1x20xf32>
    %132 = arith.negf %131 : vector<1x20xf32>
    %133 = math.exp %132 : vector<1x20xf32>
    %cst_44 = arith.constant 1.000000e+00 : f32
    %134 = vector.broadcast %cst_44 : f32 to vector<1x20xf32>
    %135 = arith.addf %134, %133 : vector<1x20xf32>
    %136 = arith.divf %134, %135 : vector<1x20xf32>
    %137 = vector.extract_strided_slice %136 {offsets = [0, 0], sizes = [1, 10], strides = [1, 1]} : vector<1x20xf32> to vector<1x10xf32>
    %138 = vector.extract_strided_slice %136 {offsets = [0, 10], sizes = [1, 10], strides = [1, 1]} : vector<1x20xf32> to vector<1x10xf32>
    %139 = vector.extract_strided_slice %126 {offsets = [0, 20], sizes = [1, 10], strides = [1, 1]} : vector<1x30xf32> to vector<1x10xf32>
    %140 = vector.extract_strided_slice %128 {offsets = [0, 20], sizes = [1, 10], strides = [1, 1]} : vector<1x30xf32> to vector<1x10xf32>
    %141 = arith.mulf %137, %140 : vector<1x10xf32>
    %142 = arith.addf %139, %141 : vector<1x10xf32>
    %143 = math.tanh %142 : vector<1x10xf32>
    %cst_45 = arith.constant 1.000000e+00 : f32
    %144 = vector.broadcast %cst_45 : f32 to vector<1x10xf32>
    %145 = arith.subf %144, %138 : vector<1x10xf32>
    %146 = arith.mulf %145, %143 : vector<1x10xf32>
    %147 = arith.mulf %138, %111 : vector<1x10xf32>
    %148 = arith.addf %146, %147 : vector<1x10xf32>
    %149 = arith.index_cast %c3_i32 : i32 to index
    %c0_46 = arith.constant 0 : index
    %c0_47 = arith.constant 0 : index
    %150 = vector.load %arg8[%149, %c0_46, %c0_47] : memref<8x1x10xf32, #tpu.memory_space<vmem>>, vector<1x1x10xf32>
    %151 = vector.shape_cast %150 : vector<1x1x10xf32> to vector<1x10xf32>
    %152 = vector.shape_cast %148 : vector<1x10xf32> to vector<1x1x10xf32>
    tpu.vector_store %arg8[%149, %c0_46, %c0_47], %152 {strides = array<i32>} : memref<8x1x10xf32, #tpu.memory_space<vmem>>, vector<1x1x10xf32>,
    %c4_i32 = arith.constant 4 : i32
    %153 = arith.index_cast %c4_i32 : i32 to index
    %154 = memref.load %arg0[%153] : memref<8xi32, #tpu.memory_space<smem>>
    %155 = arith.index_cast %154 : i32 to index
    %c0_48 = arith.constant 0 : index
    %c0_49 = arith.constant 0 : index
    %156 = vector.load %arg1[%155, %c0_48, %c0_49] : memref<32x1x10xf32, #tpu.memory_space<vmem>>, vector<1x1x10xf32>
    %157 = vector.shape_cast %156 : vector<1x1x10xf32> to vector<1x10xf32>
    %158 = arith.index_cast %c4_i32 : i32 to index
    %c0_50 = arith.constant 0 : index
    %c0_51 = arith.constant 0 : index
    %159 = vector.load %arg2[%158, %c0_50, %c0_51] : memref<8x1x10xf32, #tpu.memory_space<vmem>>, vector<1x1x10xf32>
    %160 = vector.shape_cast %159 : vector<1x1x10xf32> to vector<1x10xf32>
    %161 = arith.mulf %157, %160 : vector<1x10xf32>
    %cst_52 = arith.constant dense<0.000000e+00> : vector<1x30xf32>
    %162 = tpu.matmul %161, %0, %cst_52 {dimension_numbers = #tpu.dot_dimension_numbers<[1], [0], [0], [1], [0, 0, 1, 1], [], []>} : vector<1x10xf32>, vector<10x30xf32>, vector<1x30xf32> -> vector<1x30xf32>
    %163 = arith.addf %162, %2 : vector<1x30xf32>
    %cst_53 = arith.constant dense<0.000000e+00> : vector<1x30xf32>
    %164 = tpu.matmul %148, %1, %cst_53 {dimension_numbers = #tpu.dot_dimension_numbers<[1], [0], [0], [1], [0, 0, 1, 1], [], []>} : vector<1x10xf32>, vector<10x30xf32>, vector<1x30xf32> -> vector<1x30xf32>
    %165 = arith.addf %164, %3 : vector<1x30xf32>
    %166 = vector.extract_strided_slice %163 {offsets = [0, 0], sizes = [1, 20], strides = [1, 1]} : vector<1x30xf32> to vector<1x20xf32>
    %167 = vector.extract_strided_slice %165 {offsets = [0, 0], sizes = [1, 20], strides = [1, 1]} : vector<1x30xf32> to vector<1x20xf32>
    %168 = arith.addf %166, %167 : vector<1x20xf32>
    %169 = arith.negf %168 : vector<1x20xf32>
    %170 = math.exp %169 : vector<1x20xf32>
    %cst_54 = arith.constant 1.000000e+00 : f32
    %171 = vector.broadcast %cst_54 : f32 to vector<1x20xf32>
    %172 = arith.addf %171, %170 : vector<1x20xf32>
    %173 = arith.divf %171, %172 : vector<1x20xf32>
    %174 = vector.extract_strided_slice %173 {offsets = [0, 0], sizes = [1, 10], strides = [1, 1]} : vector<1x20xf32> to vector<1x10xf32>
    %175 = vector.extract_strided_slice %173 {offsets = [0, 10], sizes = [1, 10], strides = [1, 1]} : vector<1x20xf32> to vector<1x10xf32>
    %176 = vector.extract_strided_slice %163 {offsets = [0, 20], sizes = [1, 10], strides = [1, 1]} : vector<1x30xf32> to vector<1x10xf32>
    %177 = vector.extract_strided_slice %165 {offsets = [0, 20], sizes = [1, 10], strides = [1, 1]} : vector<1x30xf32> to vector<1x10xf32>
    %178 = arith.mulf %174, %177 : vector<1x10xf32>
    %179 = arith.addf %176, %178 : vector<1x10xf32>
    %180 = math.tanh %179 : vector<1x10xf32>
    %cst_55 = arith.constant 1.000000e+00 : f32
    %181 = vector.broadcast %cst_55 : f32 to vector<1x10xf32>
    %182 = arith.subf %181, %175 : vector<1x10xf32>
    %183 = arith.mulf %182, %180 : vector<1x10xf32>
    %184 = arith.mulf %175, %148 : vector<1x10xf32>
    %185 = arith.addf %183, %184 : vector<1x10xf32>
    %186 = arith.index_cast %c4_i32 : i32 to index
    %c0_56 = arith.constant 0 : index
    %c0_57 = arith.constant 0 : index
    %187 = vector.load %arg8[%186, %c0_56, %c0_57] : memref<8x1x10xf32, #tpu.memory_space<vmem>>, vector<1x1x10xf32>
    %188 = vector.shape_cast %187 : vector<1x1x10xf32> to vector<1x10xf32>
    %189 = vector.shape_cast %185 : vector<1x10xf32> to vector<1x1x10xf32>
    tpu.vector_store %arg8[%186, %c0_56, %c0_57], %189 {strides = array<i32>} : memref<8x1x10xf32, #tpu.memory_space<vmem>>, vector<1x1x10xf32>,
    %c5_i32 = arith.constant 5 : i32
    %190 = arith.index_cast %c5_i32 : i32 to index
    %191 = memref.load %arg0[%190] : memref<8xi32, #tpu.memory_space<smem>>
    %192 = arith.index_cast %191 : i32 to index
    %c0_58 = arith.constant 0 : index
    %c0_59 = arith.constant 0 : index
    %193 = vector.load %arg1[%192, %c0_58, %c0_59] : memref<32x1x10xf32, #tpu.memory_space<vmem>>, vector<1x1x10xf32>
    %194 = vector.shape_cast %193 : vector<1x1x10xf32> to vector<1x10xf32>
    %195 = arith.index_cast %c5_i32 : i32 to index
    %c0_60 = arith.constant 0 : index
    %c0_61 = arith.constant 0 : index
    %196 = vector.load %arg2[%195, %c0_60, %c0_61] : memref<8x1x10xf32, #tpu.memory_space<vmem>>, vector<1x1x10xf32>
    %197 = vector.shape_cast %196 : vector<1x1x10xf32> to vector<1x10xf32>
    %198 = arith.mulf %194, %197 : vector<1x10xf32>
    %cst_62 = arith.constant dense<0.000000e+00> : vector<1x30xf32>
    %199 = tpu.matmul %198, %0, %cst_62 {dimension_numbers = #tpu.dot_dimension_numbers<[1], [0], [0], [1], [0, 0, 1, 1], [], []>} : vector<1x10xf32>, vector<10x30xf32>, vector<1x30xf32> -> vector<1x30xf32>
    %200 = arith.addf %199, %2 : vector<1x30xf32>
    %cst_63 = arith.constant dense<0.000000e+00> : vector<1x30xf32>
    %201 = tpu.matmul %185, %1, %cst_63 {dimension_numbers = #tpu.dot_dimension_numbers<[1], [0], [0], [1], [0, 0, 1, 1], [], []>} : vector<1x10xf32>, vector<10x30xf32>, vector<1x30xf32> -> vector<1x30xf32>
    %202 = arith.addf %201, %3 : vector<1x30xf32>
    %203 = vector.extract_strided_slice %200 {offsets = [0, 0], sizes = [1, 20], strides = [1, 1]} : vector<1x30xf32> to vector<1x20xf32>
    %204 = vector.extract_strided_slice %202 {offsets = [0, 0], sizes = [1, 20], strides = [1, 1]} : vector<1x30xf32> to vector<1x20xf32>
    %205 = arith.addf %203, %204 : vector<1x20xf32>
    %206 = arith.negf %205 : vector<1x20xf32>
    %207 = math.exp %206 : vector<1x20xf32>
    %cst_64 = arith.constant 1.000000e+00 : f32
    %208 = vector.broadcast %cst_64 : f32 to vector<1x20xf32>
    %209 = arith.addf %208, %207 : vector<1x20xf32>
    %210 = arith.divf %208, %209 : vector<1x20xf32>
    %211 = vector.extract_strided_slice %210 {offsets = [0, 0], sizes = [1, 10], strides = [1, 1]} : vector<1x20xf32> to vector<1x10xf32>
    %212 = vector.extract_strided_slice %210 {offsets = [0, 10], sizes = [1, 10], strides = [1, 1]} : vector<1x20xf32> to vector<1x10xf32>
    %213 = vector.extract_strided_slice %200 {offsets = [0, 20], sizes = [1, 10], strides = [1, 1]} : vector<1x30xf32> to vector<1x10xf32>
    %214 = vector.extract_strided_slice %202 {offsets = [0, 20], sizes = [1, 10], strides = [1, 1]} : vector<1x30xf32> to vector<1x10xf32>
    %215 = arith.mulf %211, %214 : vector<1x10xf32>
    %216 = arith.addf %213, %215 : vector<1x10xf32>
    %217 = math.tanh %216 : vector<1x10xf32>
    %cst_65 = arith.constant 1.000000e+00 : f32
    %218 = vector.broadcast %cst_65 : f32 to vector<1x10xf32>
    %219 = arith.subf %218, %212 : vector<1x10xf32>
    %220 = arith.mulf %219, %217 : vector<1x10xf32>
    %221 = arith.mulf %212, %185 : vector<1x10xf32>
    %222 = arith.addf %220, %221 : vector<1x10xf32>
    %223 = arith.index_cast %c5_i32 : i32 to index
    %c0_66 = arith.constant 0 : index
    %c0_67 = arith.constant 0 : index
    %224 = vector.load %arg8[%223, %c0_66, %c0_67] : memref<8x1x10xf32, #tpu.memory_space<vmem>>, vector<1x1x10xf32>
    %225 = vector.shape_cast %224 : vector<1x1x10xf32> to vector<1x10xf32>
    %226 = vector.shape_cast %222 : vector<1x10xf32> to vector<1x1x10xf32>
    tpu.vector_store %arg8[%223, %c0_66, %c0_67], %226 {strides = array<i32>} : memref<8x1x10xf32, #tpu.memory_space<vmem>>, vector<1x1x10xf32>,
    %c6_i32 = arith.constant 6 : i32
    %227 = arith.index_cast %c6_i32 : i32 to index
    %228 = memref.load %arg0[%227] : memref<8xi32, #tpu.memory_space<smem>>
    %229 = arith.index_cast %228 : i32 to index
    %c0_68 = arith.constant 0 : index
    %c0_69 = arith.constant 0 : index
    %230 = vector.load %arg1[%229, %c0_68, %c0_69] : memref<32x1x10xf32, #tpu.memory_space<vmem>>, vector<1x1x10xf32>
    %231 = vector.shape_cast %230 : vector<1x1x10xf32> to vector<1x10xf32>
    %232 = arith.index_cast %c6_i32 : i32 to index
    %c0_70 = arith.constant 0 : index
    %c0_71 = arith.constant 0 : index
    %233 = vector.load %arg2[%232, %c0_70, %c0_71] : memref<8x1x10xf32, #tpu.memory_space<vmem>>, vector<1x1x10xf32>
    %234 = vector.shape_cast %233 : vector<1x1x10xf32> to vector<1x10xf32>
    %235 = arith.mulf %231, %234 : vector<1x10xf32>
    %cst_72 = arith.constant dense<0.000000e+00> : vector<1x30xf32>
    %236 = tpu.matmul %235, %0, %cst_72 {dimension_numbers = #tpu.dot_dimension_numbers<[1], [0], [0], [1], [0, 0, 1, 1], [], []>} : vector<1x10xf32>, vector<10x30xf32>, vector<1x30xf32> -> vector<1x30xf32>
    %237 = arith.addf %236, %2 : vector<1x30xf32>
    %cst_73 = arith.constant dense<0.000000e+00> : vector<1x30xf32>
    %238 = tpu.matmul %222, %1, %cst_73 {dimension_numbers = #tpu.dot_dimension_numbers<[1], [0], [0], [1], [0, 0, 1, 1], [], []>} : vector<1x10xf32>, vector<10x30xf32>, vector<1x30xf32> -> vector<1x30xf32>
    %239 = arith.addf %238, %3 : vector<1x30xf32>
    %240 = vector.extract_strided_slice %237 {offsets = [0, 0], sizes = [1, 20], strides = [1, 1]} : vector<1x30xf32> to vector<1x20xf32>
    %241 = vector.extract_strided_slice %239 {offsets = [0, 0], sizes = [1, 20], strides = [1, 1]} : vector<1x30xf32> to vector<1x20xf32>
    %242 = arith.addf %240, %241 : vector<1x20xf32>
    %243 = arith.negf %242 : vector<1x20xf32>
    %244 = math.exp %243 : vector<1x20xf32>
    %cst_74 = arith.constant 1.000000e+00 : f32
    %245 = vector.broadcast %cst_74 : f32 to vector<1x20xf32>
    %246 = arith.addf %245, %244 : vector<1x20xf32>
    %247 = arith.divf %245, %246 : vector<1x20xf32>
    %248 = vector.extract_strided_slice %247 {offsets = [0, 0], sizes = [1, 10], strides = [1, 1]} : vector<1x20xf32> to vector<1x10xf32>
    %249 = vector.extract_strided_slice %247 {offsets = [0, 10], sizes = [1, 10], strides = [1, 1]} : vector<1x20xf32> to vector<1x10xf32>
    %250 = vector.extract_strided_slice %237 {offsets = [0, 20], sizes = [1, 10], strides = [1, 1]} : vector<1x30xf32> to vector<1x10xf32>
    %251 = vector.extract_strided_slice %239 {offsets = [0, 20], sizes = [1, 10], strides = [1, 1]} : vector<1x30xf32> to vector<1x10xf32>
    %252 = arith.mulf %248, %251 : vector<1x10xf32>
    %253 = arith.addf %250, %252 : vector<1x10xf32>
    %254 = math.tanh %253 : vector<1x10xf32>
    %cst_75 = arith.constant 1.000000e+00 : f32
    %255 = vector.broadcast %cst_75 : f32 to vector<1x10xf32>
    %256 = arith.subf %255, %249 : vector<1x10xf32>
    %257 = arith.mulf %256, %254 : vector<1x10xf32>
    %258 = arith.mulf %249, %222 : vector<1x10xf32>
    %259 = arith.addf %257, %258 : vector<1x10xf32>
    %260 = arith.index_cast %c6_i32 : i32 to index
    %c0_76 = arith.constant 0 : index
    %c0_77 = arith.constant 0 : index
    %261 = vector.load %arg8[%260, %c0_76, %c0_77] : memref<8x1x10xf32, #tpu.memory_space<vmem>>, vector<1x1x10xf32>
    %262 = vector.shape_cast %261 : vector<1x1x10xf32> to vector<1x10xf32>
    %263 = vector.shape_cast %259 : vector<1x10xf32> to vector<1x1x10xf32>
    tpu.vector_store %arg8[%260, %c0_76, %c0_77], %263 {strides = array<i32>} : memref<8x1x10xf32, #tpu.memory_space<vmem>>, vector<1x1x10xf32>,
    %c7_i32 = arith.constant 7 : i32
    %264 = arith.index_cast %c7_i32 : i32 to index
    %265 = memref.load %arg0[%264] : memref<8xi32, #tpu.memory_space<smem>>
    %266 = arith.index_cast %265 : i32 to index
    %c0_78 = arith.constant 0 : index
    %c0_79 = arith.constant 0 : index
    %267 = vector.load %arg1[%266, %c0_78, %c0_79] : memref<32x1x10xf32, #tpu.memory_space<vmem>>, vector<1x1x10xf32>
    %268 = vector.shape_cast %267 : vector<1x1x10xf32> to vector<1x10xf32>
    %269 = arith.index_cast %c7_i32 : i32 to index
    %c0_80 = arith.constant 0 : index
    %c0_81 = arith.constant 0 : index
    %270 = vector.load %arg2[%269, %c0_80, %c0_81] : memref<8x1x10xf32, #tpu.memory_space<vmem>>, vector<1x1x10xf32>
    %271 = vector.shape_cast %270 : vector<1x1x10xf32> to vector<1x10xf32>
    %272 = arith.mulf %268, %271 : vector<1x10xf32>
    %cst_82 = arith.constant dense<0.000000e+00> : vector<1x30xf32>
    %273 = tpu.matmul %272, %0, %cst_82 {dimension_numbers = #tpu.dot_dimension_numbers<[1], [0], [0], [1], [0, 0, 1, 1], [], []>} : vector<1x10xf32>, vector<10x30xf32>, vector<1x30xf32> -> vector<1x30xf32>
    %274 = arith.addf %273, %2 : vector<1x30xf32>
    %cst_83 = arith.constant dense<0.000000e+00> : vector<1x30xf32>
    %275 = tpu.matmul %259, %1, %cst_83 {dimension_numbers = #tpu.dot_dimension_numbers<[1], [0], [0], [1], [0, 0, 1, 1], [], []>} : vector<1x10xf32>, vector<10x30xf32>, vector<1x30xf32> -> vector<1x30xf32>
    %276 = arith.addf %275, %3 : vector<1x30xf32>
    %277 = vector.extract_strided_slice %274 {offsets = [0, 0], sizes = [1, 20], strides = [1, 1]} : vector<1x30xf32> to vector<1x20xf32>
    %278 = vector.extract_strided_slice %276 {offsets = [0, 0], sizes = [1, 20], strides = [1, 1]} : vector<1x30xf32> to vector<1x20xf32>
    %279 = arith.addf %277, %278 : vector<1x20xf32>
    %280 = arith.negf %279 : vector<1x20xf32>
    %281 = math.exp %280 : vector<1x20xf32>
    %cst_84 = arith.constant 1.000000e+00 : f32
    %282 = vector.broadcast %cst_84 : f32 to vector<1x20xf32>
    %283 = arith.addf %282, %281 : vector<1x20xf32>
    %284 = arith.divf %282, %283 : vector<1x20xf32>
    %285 = vector.extract_strided_slice %284 {offsets = [0, 0], sizes = [1, 10], strides = [1, 1]} : vector<1x20xf32> to vector<1x10xf32>
    %286 = vector.extract_strided_slice %284 {offsets = [0, 10], sizes = [1, 10], strides = [1, 1]} : vector<1x20xf32> to vector<1x10xf32>
    %287 = vector.extract_strided_slice %274 {offsets = [0, 20], sizes = [1, 10], strides = [1, 1]} : vector<1x30xf32> to vector<1x10xf32>
    %288 = vector.extract_strided_slice %276 {offsets = [0, 20], sizes = [1, 10], strides = [1, 1]} : vector<1x30xf32> to vector<1x10xf32>
    %289 = arith.mulf %285, %288 : vector<1x10xf32>
    %290 = arith.addf %287, %289 : vector<1x10xf32>
    %291 = math.tanh %290 : vector<1x10xf32>
    %cst_85 = arith.constant 1.000000e+00 : f32
    %292 = vector.broadcast %cst_85 : f32 to vector<1x10xf32>
    %293 = arith.subf %292, %286 : vector<1x10xf32>
    %294 = arith.mulf %293, %291 : vector<1x10xf32>
    %295 = arith.mulf %286, %259 : vector<1x10xf32>
    %296 = arith.addf %294, %295 : vector<1x10xf32>
    %297 = arith.index_cast %c7_i32 : i32 to index
    %c0_86 = arith.constant 0 : index
    %c0_87 = arith.constant 0 : index
    %298 = vector.load %arg8[%297, %c0_86, %c0_87] : memref<8x1x10xf32, #tpu.memory_space<vmem>>, vector<1x1x10xf32>
    %299 = vector.shape_cast %298 : vector<1x1x10xf32> to vector<1x10xf32>
    %300 = vector.shape_cast %296 : vector<1x10xf32> to vector<1x1x10xf32>
    tpu.vector_store %arg8[%297, %c0_86, %c0_87], %300 {strides = array<i32>} : memref<8x1x10xf32, #tpu.memory_space<vmem>>, vector<1x1x10xf32>,
    %c8_i32 = arith.constant 8 : i32
    return
  }
}

</mosaic_0001>

<bundles_post_ra>
// kernel: tpu_custom_call.1
= control target key start
LH: loop header
LB: loop body
LE: loop exit
PB: predicated region body
PF: predicated region fallthrough
CT: control target
= control target key end

     0   :  { %13 = vsyncpa [#allocation4], 0  ;;  %s1271_s0 = inlined_call_operand.vmem [shape: s32[8], index: 0, kind: input, shape index: {}]   ;;  %s1272_s1 = inlined_call_operand.vmem [shape: f32[32,1,10], index: 1, kind: input, shape index: {}]   ;;  %s1273_s2 = inlined_call_operand.vmem [shape: f32[8,1,10], index: 2, kind: input, shape index: {}]   ;;  %s1274_s3 = inlined_call_operand.vmem [shape: f32[10,30], index: 3, kind: input, shape index: {}]   ;;  %s1275_s4 = inlined_call_operand.vmem [shape: f32[10,30], index: 4, kind: input, shape index: {}]   ;;  %s1276_s5 = inlined_call_operand.vmem [shape: f32[1,30], index: 5, kind: input, shape index: {}]   ;;  %s1277_s6 = inlined_call_operand.vmem [shape: f32[1,30], index: 6, kind: input, shape index: {}]   ;;  %s1278_s7 = inlined_call_operand.vmem [shape: f32[1,10], index: 7, kind: input, shape index: {}]   ;;  %s1279_s8 = inlined_call_operand.hbm [shape: f32[8,1,10], index: 8, kind: output, shape index: {}]  }
   0x1   :  { %14 = vsyncpa [#allocation3], 0  ;;  %s20_s29 = sshll.u32 %s1271_s0, 4  ;;  %s1008_s30 = smov [#allocation2]   ;;  %s21_s29 = int_to_ptr.vmem [resolvable:$true] %s20_s29 }
   0x2   :  { %23 = dma.vmem_to_smem %s21_s29, 16, %s1008_s30, [#allocation4]  }
   0x3   :  { %1004 = dma.done.wait [#allocation4], 16  }
   0x4   :  { %1005 = vsyncadd [#allocation4], 4294967280 }
   0x5   :  { %42 = sfence }
   0x6   :  { %v1067_v0 = vld [vmem:[%s1275_s4 + $0x8] sm:$0x3]  ;;  %vm59_vm0 = vcmask 1041408   ;;  %v1072_v1 = vld [vmem:[%s1275_s4] sm:$0xff]  ;;  %vm55_vm1 = vcmask 80896   ;;  %s50_s4 = sld [smem:[#allocation2]] }
   0x7   :  { %859 = vmatpush.msk.msra.mxu1 %vm59_vm0, %v1067_v0  ;;  %v49_v2 = vld [vmem:[%s1278_s7] sm:$0x1]  ;;  %v1082_v3 = vld [vmem:[%s1274_s3 + $0x8] sm:$0x3]  ;;  %866 = vmatpush.msk.msra.mxu3 %vm59_vm0, %v1067_v0  ;;  %s1009_s24 = smov 108   ;;  %s1012_s29 = smov 10  }
   0x8   :  { %v1087_v4 = vld [vmem:[%s1274_s3] sm:$0xff]  ;;  %857 = vmatpush.msk.msra.mxu0 %vm59_vm0, %v1082_v3  ;;  %864 = vmatpush.msk.msra.mxu2 %vm59_vm0, %v1082_v3  ;;  %s862_s30 = sld [smem:[#allocation2 + $0x1]]  ;;  %vm156_vm6 = vcmask 73728   ;;  %s1015_s23 = smov 1  }
   0x9   :  { %104 = vmatpush.msra.mxu1 %v1072_v1  ;;  %204 = vmatpush.msra.mxu3 %v1072_v1  ;;  %v53_v5 = vld [vmem:[%s1273_s2] sm:$0x1]  ;;  %v863_v41 = vld [vmem:[%s1273_s2 + $0x1] sm:$0x1]  ;;  %s883_s22 = sld [smem:[#allocation2 + $0x4]] }
   0xa   :  { %860 = vmatmul.msk.f32.vlgmr.msra.gmra.mxu1 %vm55_vm1, %v49_v2  ;;  %78 = vmatpush.msra.mxu0 %v1087_v4  ;;  %v1128_v8 = vld [vmem:[%s1277_s6] sm:$0x1]  ;;  %s1011_s6 = smov 118   ;;  %s897_s0 = sld [smem:[#allocation2 + $0x6]] }
   0xb   :  { %182 = vmatpush.msra.mxu2 %v1087_v4  ;;  %873 = vmatpush.msk.msrb.mxu1 %vm59_vm0, %v1067_v0  ;;  %v1135_v11 = vld [vmem:[%s1276_s5] sm:$0x1]  ;;  %s1010_s5 = smov 20   ;;  %s904_s17 = sld [smem:[#allocation2 + $0x7]] }
   0xc   :  { %871 = vmatpush.msk.msrb.mxu0 %vm59_vm0, %v1082_v3  ;;  %880 = vmatpush.msk.msrb.mxu3 %vm59_vm0, %v1067_v0  ;;  %s51_s21 = scalar_lea.vmem %s1272_s1, %s50_s4  ;;  %v919_v33 = vld [vmem:[%s1278_s7] ss:$0 sm:$0xff]  ;;  %s869_s7 = sld [smem:[#allocation2 + $0x2]] }
   0xd   :  { %300 = vmatpush.msrb.mxu1 %v1072_v1  ;;  %878 = vmatpush.msk.msrb.mxu2 %vm59_vm0, %v1082_v3  ;;  %v52_v6 = vld [vmem:[%s51_s21] sm:$0x1]  ;;  %s876_s4 = sld [smem:[#allocation2 + $0x3]] }
   0xe   :  { %278 = vmatpush.msrb.mxu0 %v1087_v4  ;;  %396 = vmatpush.msrb.mxu3 %v1072_v1  ;;  %v54_v7 = vmul.f32 %v53_v5, %v52_v6  ;;  %s159_s11 = scalar_lea.vmem %s1272_s1, %s862_s30 }
   0xf   :  { %374 = vmatpush.msrb.mxu2 %v1087_v4  ;;  %887 = vmatpush.msk.msra.mxu1 %vm59_vm0, %v1067_v0  ;;  %v160_v40 = vld [vmem:[%s159_s11] sm:$0x1]  ;;  %s447_s26 = scalar_lea.vmem %s1272_s1, %s883_s22  ;;  %s836_s22 = sshll.u32 %s1279_s8, 4  ;;  %s837_s22 = int_to_ptr.hbm [resolvable:$true] %s836_s22 }
  0x10   :  { %858 = vmatmul.msk.f32.vlgmr.msra.gmra.mxu0 %vm55_vm1, %v54_v7  ;;  %v163_v42 = vmul.f32 %v863_v41, %v160_v40  ;;  %s639_s14 = scalar_lea.vmem %s1272_s1, %s897_s0 }
  0x11   :  { %492 = vmatpush.msra.mxu1 %v1072_v1  ;;  %885 = vmatpush.msk.msra.mxu0 %vm59_vm0, %v1082_v3  ;;  %s735_s18 = scalar_lea.vmem %s1272_s1, %s904_s17 }
  0x12   :  { %865 = vmatmul.msk.f32.vlgmr.msra.gmra.mxu2 %vm55_vm1, %v163_v42  ;;  %s255_s15 = scalar_lea.vmem %s1272_s1, %s869_s7 }
  0x13   :  { %470 = vmatpush.msra.mxu0 %v1087_v4  ;;  %892 = vmatpush.msk.msra.mxu2 %vm59_vm0, %v1082_v3  ;;  %s351_s19 = scalar_lea.vmem %s1272_s1, %s876_s4 }
  0x15   :  { %566 = vmatpush.msra.mxu2 %v1087_v4 }
  0x87   :  { %v106_v9 = vpop.f32.mrf.mxu1 }
  0x88   :  { %v107_v10 = vadd.f32 %v106_v9, %v1128_v8 }
  0x8a   :  { %130 = vrot.lane.b32.xlu0 %v107_v10, %s1009_s24 }
  0x8d   :  { %v80_v12 = vpop.f32.mrf.mxu0 }
  0x8e   :  { %v81_v13 = vadd.f32 %v80_v12, %v1135_v11 }
  0x90   :  { %v109_v14 = vadd.f32 %v107_v10, %v81_v13 }
  0x92   :  { %v861_v15 = vmul.f32 -1.442695, %v109_v14  ;;  %v256_v14 = vld [vmem:[%s255_s15] sm:$0x1] }
  0x94   :  { %920 = vpow2.f32 %v861_v15  ;;  %v870_v15 = vld [vmem:[%s1273_s2 + $0x2] sm:$0x1] }
  0x95   :  { %v184_v46 = vpop.f32.mrf.mxu2 }
  0x96   :  { %v185_v47 = vadd.f32 %v184_v46, %v1135_v11  ;;  %v352_v46 = vld [vmem:[%s351_s19] sm:$0x1] }
  0x9a   :  { %v921_v16 = vpop.eup %920 }
  0x9b   :  { %v113_v17 = vadd.f32 1.0, %v921_v16  ;;  %v259_v16 = vmul.f32 %v870_v15, %v256_v14 }
  0x9d   :  { %922 = vrcp.f32 %v113_v17  ;;  %v125_v23 = vand.u32 2147483648, %v113_v17  ;;  %vm119_vm3 = vweird.f32 %v113_v17  ;;  %v123_v24 = vand.u32 2147483647, %v113_v17  ;;  %872 = vmatmul.msk.f32.vlgmr.msrb.gmra.mxu0 %vm55_vm1, %v259_v16  ;;  %v448_v16 = vld [vmem:[%s447_s26] sm:$0x1] }
  0x9e   :  { %899 = vmatpush.msk.msrb.mxu0 %vm59_vm0, %v1082_v3 }
  0x9f   :  { %v126_v26 = vor.u32 1.1754944e-38, %v125_v23  ;;  %vm124_vm5 = vcmp.eq.f32.partialorder %v123_v24, 8.507059e+37 }
  0xa0   :  { %662 = vmatpush.msrb.mxu0 %v1087_v4 }
  0xa3   :  { %v923_v18 = vpop.eup %922 }
  0xa4   :  { %v115_v19 = vmul.f32 %v923_v18, %v113_v17  ;;  %vm120_vm2 = vweird.f32 %v923_v18 }
  0xa5   :  { %vm121_vm4 = vmor %vm119_vm3, %vm120_vm2 }
  0xa6   :  { %v116_v20 = vsub.f32 1.0, %v115_v19 }
  0xa8   :  { %v117_v21 = vmul.f32 %v923_v18, %v116_v20 }
  0xaa   :  { %v118_v22 = vadd.f32 %v923_v18, %v117_v21 }
  0xac   :  { %v122_v25 = vsel %vm121_vm4, %v923_v18, %v118_v22 }
  0xad   :  { %v127_v28 = vsel %vm124_vm5, %v126_v26, %v122_v25 }
  0xae   :  { %v140_v35 = vsub.f32 1.0, %v127_v28 }
  0xfc   :  { %v131_v27 = vpop.permute.xlu0 %130 }
  0xfd   :  { %v133_v29 = vmul.f32 %v131_v27, %v127_v28 }
  0xff   :  { %135 = vrot.lane.b32.xlu0 %v133_v29, %s1010_s5 }
 0x11a   :  { %v280_v20 = vpop.f32.mrf.mxu0 }
 0x11b   :  { %v281_v21 = vadd.f32 %v280_v20, %v1135_v11 }
 0x171   :  { %v136_v30 = vpop.permute.xlu0 %135 }
 0x172   :  { %v138_v31 = vadd.f32 %v136_v30, %v81_v13 }
 0x174   :  { %924 = vtanh.f32 %v138_v31 }
 0x17a   :  { %v925_v32 = vpop.eup %924 }
 0x17b   :  { %142 = vrot.lane.b32.xlu1 %v925_v32, %s1011_s6 }
 0x183   :  { %147 = vrot.lane.b32.xlu1 %v919_v33, %s1012_s29  ;;  %s890_s29 = sld [smem:[#allocation2 + $0x5]] }
 0x189   :  { %s543_s10 = scalar_lea.vmem %s1272_s1, %s890_s29  ;;  %s1013_s1 = smov [#allocation5]  }
 0x1ed   :  { %v143_v34 = vpop.permute.xlu1 %142 }
 0x1ee   :  { %v145_v37 = vmul.f32 %v143_v34, %v140_v35 }
 0x1f5   :  { %v148_v36 = vpop.permute.xlu1 %147 }
 0x1f6   :  { %v150_v38 = vmul.f32 %v148_v36, %v127_v28 }
 0x1f8   :  { %v151_v39 = vadd.f32 %v150_v38, %v145_v37 }
 0x1fa   :  { %153 = vrot.lane.b32.xlu2 %v151_v39, %s1011_s6 }
 0x254   :  { %v154_v43 = vpop.permute.xlu2 %153 }
 0x255   :  { %157 = vst.msk [vmem:[#allocation5] sm:$0x1] %vm156_vm6, %v154_v43  ;;  %867 = vmatmul.msk.f32.vlgmr.msra.gmra.mxu3 %vm55_vm1, %v154_v43 }
 0x256   :  { %894 = vmatpush.msk.msra.mxu3 %vm59_vm0, %v1067_v0 }
 0x258   :  { %588 = vmatpush.msra.mxu3 %v1072_v1 }
 0x2d8   :  { %v206_v44 = vpop.f32.mrf.mxu3 }
 0x2d9   :  { %v207_v45 = vadd.f32 %v206_v44, %v1128_v8 }
 0x2db   :  { %230 = vrot.lane.b32.xlu2 %v207_v45, %s1009_s24  ;;  %v209_v48 = vadd.f32 %v207_v45, %v185_v47 }
 0x2dd   :  { %v868_v49 = vmul.f32 -1.442695, %v209_v48 }
 0x2df   :  { %926 = vpow2.f32 %v868_v49 }
 0x2e5   :  { %v927_v50 = vpop.eup %926 }
 0x2e6   :  { %v213_v51 = vadd.f32 1.0, %v927_v50 }
 0x2e8   :  { %928 = vrcp.f32 %v213_v51  ;;  %v225_v57 = vand.u32 2147483648, %v213_v51  ;;  %vm219_vm8 = vweird.f32 %v213_v51  ;;  %v223_v58 = vand.u32 2147483647, %v213_v51 }
 0x2ea   :  { %v226_v60 = vor.u32 1.1754944e-38, %v225_v57  ;;  %vm224_vm10 = vcmp.eq.f32.partialorder %v223_v58, 8.507059e+37 }
 0x2ee   :  { %v929_v52 = vpop.eup %928 }
 0x2ef   :  { %v215_v53 = vmul.f32 %v929_v52, %v213_v51  ;;  %vm220_vm7 = vweird.f32 %v929_v52 }
 0x2f0   :  { %vm221_vm9 = vmor %vm219_vm8, %vm220_vm7 }
 0x2f1   :  { %v216_v54 = vsub.f32 1.0, %v215_v53 }
 0x2f3   :  { %v217_v55 = vmul.f32 %v929_v52, %v216_v54 }
 0x2f5   :  { %v218_v56 = vadd.f32 %v929_v52, %v217_v55 }
 0x2f7   :  { %v222_v59 = vsel %vm221_vm9, %v929_v52, %v218_v56 }
 0x2f8   :  { %v227_v62 = vsel %vm224_vm10, %v226_v60, %v222_v59 }
 0x2f9   :  { %v240_v7 = vsub.f32 1.0, %v227_v62  ;;  %v246_v10 = vmul.f32 %v227_v62, %v151_v39 }
 0x335   :  { %v231_v61 = vpop.permute.xlu2 %230 }
 0x336   :  { %v233_v63 = vmul.f32 %v231_v61, %v227_v62 }
 0x338   :  { %235 = vrot.lane.b32.xlu0 %v233_v63, %s1010_s5 }
 0x3aa   :  { %v236_v2 = vpop.permute.xlu0 %235 }
 0x3ab   :  { %v238_v5 = vadd.f32 %v236_v2, %v185_v47  ;;  %v877_v47 = vld [vmem:[%s1273_s2 + $0x3] sm:$0x1] }
 0x3ac   :  { %v355_v48 = vmul.f32 %v877_v47, %v352_v46 }
 0x3ad   :  { %930 = vtanh.f32 %v238_v5 }
 0x3ae   :  { %879 = vmatmul.msk.f32.vlgmr.msrb.gmra.mxu2 %vm55_vm1, %v355_v48  ;;  %v544_v48 = vld [vmem:[%s543_s10] sm:$0x1] }
 0x3af   :  { %906 = vmatpush.msk.msrb.mxu2 %vm59_vm0, %v1082_v3 }
 0x3b1   :  { %758 = vmatpush.msrb.mxu2 %v1087_v4 }
 0x3b3   :  { %v931_v6 = vpop.eup %930 }
 0x3b4   :  { %242 = vrot.lane.b32.xlu1 %v931_v6, %s1011_s6 }
 0x426   :  { %v243_v9 = vpop.permute.xlu1 %242 }
 0x427   :  { %v245_v12 = vmul.f32 %v243_v9, %v240_v7 }
 0x429   :  { %v247_v13 = vadd.f32 %v246_v10, %v245_v12 }
 0x42b   :  { %249 = vrot.lane.b32.xlu2 %v247_v13, %s1011_s6 }
 0x431   :  { %v376_v52 = vpop.f32.mrf.mxu2 }
 0x432   :  { %v377_v3 = vadd.f32 %v376_v52, %v1135_v11 }
 0x485   :  { %v250_v17 = vpop.permute.xlu2 %249 }
 0x486   :  { %253 = vst.msk [vmem:[#allocation5 + $0x1] sm:$0x1] %vm156_vm6, %v250_v17  ;;  %874 = vmatmul.msk.f32.vlgmr.msrb.gmra.mxu1 %vm55_vm1, %v250_v17  ;;  %v884_v17 = vld [vmem:[%s1273_s2 + $0x4] sm:$0x1] }
 0x487   :  { %901 = vmatpush.msk.msrb.mxu1 %vm59_vm0, %v1067_v0 }
 0x489   :  { %684 = vmatpush.msrb.mxu1 %v1072_v1 }
 0x503   :  { %v302_v18 = vpop.f32.mrf.mxu1 }
 0x504   :  { %v303_v19 = vadd.f32 %v302_v18, %v1128_v8  ;;  %v451_v18 = vmul.f32 %v884_v17, %v448_v16 }
 0x506   :  { %326 = vrot.lane.b32.xlu0 %v303_v19, %s1009_s24  ;;  %v305_v22 = vadd.f32 %v303_v19, %v281_v21  ;;  %886 = vmatmul.msk.f32.vlgmr.msra.gmra.mxu0 %vm55_vm1, %v451_v18  ;;  %v640_v18 = vld [vmem:[%s639_s14] sm:$0x1] }
 0x508   :  { %v875_v23 = vmul.f32 -1.442695, %v305_v22 }
 0x50a   :  { %932 = vpow2.f32 %v875_v23 }
 0x510   :  { %v933_v24 = vpop.eup %932 }
 0x511   :  { %v309_v25 = vadd.f32 1.0, %v933_v24 }
 0x513   :  { %934 = vrcp.f32 %v309_v25  ;;  %v321_v31 = vand.u32 2147483648, %v309_v25  ;;  %vm315_vm12 = vweird.f32 %v309_v25  ;;  %v319_v32 = vand.u32 2147483647, %v309_v25 }
 0x515   :  { %v322_v34 = vor.u32 1.1754944e-38, %v321_v31  ;;  %vm320_vm14 = vcmp.eq.f32.partialorder %v319_v32, 8.507059e+37 }
 0x519   :  { %v935_v26 = vpop.eup %934 }
 0x51a   :  { %v311_v27 = vmul.f32 %v935_v26, %v309_v25  ;;  %vm316_vm11 = vweird.f32 %v935_v26 }
 0x51b   :  { %vm317_vm13 = vmor %vm315_vm12, %vm316_vm11 }
 0x51c   :  { %v312_v28 = vsub.f32 1.0, %v311_v27 }
 0x51e   :  { %v313_v29 = vmul.f32 %v935_v26, %v312_v28 }
 0x520   :  { %v314_v30 = vadd.f32 %v935_v26, %v313_v29 }
 0x522   :  { %v318_v33 = vsel %vm317_vm13, %v935_v26, %v314_v30 }
 0x523   :  { %v323_v36 = vsel %vm320_vm14, %v322_v34, %v318_v33 }
 0x524   :  { %v336_v41 = vsub.f32 1.0, %v323_v36  ;;  %v342_v43 = vmul.f32 %v323_v36, %v247_v13 }
 0x578   :  { %v327_v35 = vpop.permute.xlu0 %326 }
 0x579   :  { %v329_v37 = vmul.f32 %v327_v35, %v323_v36 }
 0x57b   :  { %331 = vrot.lane.b32.xlu1 %v329_v37, %s1010_s5 }
 0x583   :  { %v472_v22 = vpop.f32.mrf.mxu0 }
 0x584   :  { %v473_v23 = vadd.f32 %v472_v22, %v1135_v11 }
 0x5ed   :  { %v332_v38 = vpop.permute.xlu1 %331 }
 0x5ee   :  { %v334_v39 = vadd.f32 %v332_v38, %v281_v21 }
 0x5f0   :  { %936 = vtanh.f32 %v334_v39 }
 0x5f6   :  { %v937_v40 = vpop.eup %936 }
 0x5f7   :  { %338 = vrot.lane.b32.xlu2 %v937_v40, %s1011_s6 }
 0x651   :  { %v339_v42 = vpop.permute.xlu2 %338 }
 0x652   :  { %v341_v44 = vmul.f32 %v339_v42, %v336_v41 }
 0x654   :  { %v343_v45 = vadd.f32 %v342_v43, %v341_v44 }
 0x656   :  { %345 = vrot.lane.b32.xlu0 %v343_v45, %s1011_s6 }
 0x6c8   :  { %v346_v49 = vpop.permute.xlu0 %345 }
 0x6c9   :  { %349 = vst.msk [vmem:[#allocation5 + $0x2] sm:$0x1] %vm156_vm6, %v346_v49  ;;  %881 = vmatmul.msk.f32.vlgmr.msrb.gmra.mxu3 %vm55_vm1, %v346_v49  ;;  %v891_v49 = vld [vmem:[%s1273_s2 + $0x5] sm:$0x1] }
 0x6ca   :  { %908 = vmatpush.msk.msrb.mxu3 %vm59_vm0, %v1067_v0 }
 0x6cc   :  { %780 = vmatpush.msrb.mxu3 %v1072_v1 }
 0x74c   :  { %v398_v50 = vpop.f32.mrf.mxu3 }
 0x74d   :  { %v399_v51 = vadd.f32 %v398_v50, %v1128_v8  ;;  %v547_v50 = vmul.f32 %v891_v49, %v544_v48 }
 0x74f   :  { %422 = vrot.lane.b32.xlu1 %v399_v51, %s1009_s24  ;;  %v401_v53 = vadd.f32 %v399_v51, %v377_v3  ;;  %893 = vmatmul.msk.f32.vlgmr.msra.gmra.mxu2 %vm55_vm1, %v547_v50  ;;  %v736_v50 = vld [vmem:[%s735_s18] sm:$0x1] }
 0x751   :  { %v882_v4 = vmul.f32 -1.442695, %v401_v53 }
 0x753   :  { %938 = vpow2.f32 %v882_v4 }
 0x759   :  { %v939_v54 = vpop.eup %938 }
 0x75a   :  { %v405_v55 = vadd.f32 1.0, %v939_v54 }
 0x75c   :  { %940 = vrcp.f32 %v405_v55  ;;  %v417_v1 = vand.u32 2147483648, %v405_v55  ;;  %vm411_vm0 = vweird.f32 %v405_v55  ;;  %v415_v60 = vand.u32 2147483647, %v405_v55 }
 0x75e   :  { %v418_v62 = vor.u32 1.1754944e-38, %v417_v1  ;;  %vm416_vm3 = vcmp.eq.f32.partialorder %v415_v60, 8.507059e+37 }
 0x762   :  { %v941_v56 = vpop.eup %940 }
 0x763   :  { %v407_v57 = vmul.f32 %v941_v56, %v405_v55  ;;  %vm412_vm15 = vweird.f32 %v941_v56 }
 0x764   :  { %vm413_vm2 = vmor %vm411_vm0, %vm412_vm15 }
 0x765   :  { %v408_v58 = vsub.f32 1.0, %v407_v57 }
 0x767   :  { %v409_v0 = vmul.f32 %v941_v56, %v408_v58 }
 0x769   :  { %v410_v59 = vadd.f32 %v941_v56, %v409_v0 }
 0x76b   :  { %v414_v61 = vsel %vm413_vm2, %v941_v56, %v410_v59 }
 0x76c   :  { %v419_v2 = vsel %vm416_vm3, %v418_v62, %v414_v61 }
 0x76d   :  { %v432_v10 = vsub.f32 1.0, %v419_v2  ;;  %v438_v13 = vmul.f32 %v419_v2, %v343_v45 }
 0x7c1   :  { %v423_v63 = vpop.permute.xlu1 %422 }
 0x7c2   :  { %v425_v5 = vmul.f32 %v423_v63, %v419_v2 }
 0x7c4   :  { %427 = vrot.lane.b32.xlu2 %v425_v5, %s1010_s5 }
 0x7d2   :  { %v568_v53 = vpop.f32.mrf.mxu2 }
 0x7d3   :  { %v569_v4 = vadd.f32 %v568_v53, %v1135_v11 }
 0x81e   :  { %v428_v6 = vpop.permute.xlu2 %427 }
 0x81f   :  { %v430_v7 = vadd.f32 %v428_v6, %v377_v3 }
 0x821   :  { %942 = vtanh.f32 %v430_v7 }
 0x827   :  { %v943_v9 = vpop.eup %942 }
 0x828   :  { %434 = vrot.lane.b32.xlu0 %v943_v9, %s1011_s6 }
 0x89a   :  { %v435_v12 = vpop.permute.xlu0 %434 }
 0x89b   :  { %v437_v14 = vmul.f32 %v435_v12, %v432_v10 }
 0x89d   :  { %v439_v15 = vadd.f32 %v438_v13, %v437_v14 }
 0x89f   :  { %441 = vrot.lane.b32.xlu1 %v439_v15, %s1011_s6 }
 0x911   :  { %v442_v19 = vpop.permute.xlu1 %441 }
 0x912   :  { %445 = vst.msk [vmem:[#allocation5 + $0x3] sm:$0x1] %vm156_vm6, %v442_v19  ;;  %888 = vmatmul.msk.f32.vlgmr.msra.gmra.mxu1 %vm55_vm1, %v442_v19  ;;  %v898_v19 = vld [vmem:[%s1273_s2 + $0x6] sm:$0x1] }
 0x98f   :  { %v494_v20 = vpop.f32.mrf.mxu1 }
 0x990   :  { %v495_v21 = vadd.f32 %v494_v20, %v1128_v8  ;;  %v643_v20 = vmul.f32 %v898_v19, %v640_v18 }
 0x992   :  { %518 = vrot.lane.b32.xlu2 %v495_v21, %s1009_s24  ;;  %v497_v24 = vadd.f32 %v495_v21, %v473_v23  ;;  %900 = vmatmul.msk.f32.vlgmr.msrb.gmra.mxu0 %vm55_vm1, %v643_v20 }
 0x994   :  { %v889_v25 = vmul.f32 -1.442695, %v497_v24 }
 0x996   :  { %944 = vpow2.f32 %v889_v25 }
 0x99c   :  { %v945_v26 = vpop.eup %944 }
 0x99d   :  { %v501_v27 = vadd.f32 1.0, %v945_v26 }
 0x99f   :  { %946 = vrcp.f32 %v501_v27  ;;  %v513_v33 = vand.u32 2147483648, %v501_v27  ;;  %vm507_vm5 = vweird.f32 %v501_v27  ;;  %v511_v34 = vand.u32 2147483647, %v501_v27 }
 0x9a1   :  { %v514_v36 = vor.u32 1.1754944e-38, %v513_v33  ;;  %vm512_vm8 = vcmp.eq.f32.partialorder %v511_v34, 8.507059e+37 }
 0x9a5   :  { %v947_v28 = vpop.eup %946 }
 0x9a6   :  { %v503_v29 = vmul.f32 %v947_v28, %v501_v27  ;;  %vm508_vm4 = vweird.f32 %v947_v28 }
 0x9a7   :  { %vm509_vm7 = vmor %vm507_vm5, %vm508_vm4 }
 0x9a8   :  { %v504_v30 = vsub.f32 1.0, %v503_v29 }
 0x9aa   :  { %v505_v31 = vmul.f32 %v947_v28, %v504_v30 }
 0x9ac   :  { %v506_v32 = vadd.f32 %v947_v28, %v505_v31 }
 0x9ae   :  { %v510_v35 = vsel %vm509_vm7, %v947_v28, %v506_v32 }
 0x9af   :  { %v515_v38 = vsel %vm512_vm8, %v514_v36, %v510_v35 }
 0x9b0   :  { %v528_v43 = vsub.f32 1.0, %v515_v38  ;;  %v534_v45 = vmul.f32 %v515_v38, %v439_v15 }
 0x9ec   :  { %v519_v37 = vpop.permute.xlu2 %518 }
 0x9ed   :  { %v521_v39 = vmul.f32 %v519_v37, %v515_v38 }
 0x9ef   :  { %523 = vrot.lane.b32.xlu0 %v521_v39, %s1010_s5 }
 0xa0f   :  { %v664_v24 = vpop.f32.mrf.mxu0 }
 0xa10   :  { %v665_v25 = vadd.f32 %v664_v24, %v1135_v11 }
 0xa61   :  { %v524_v40 = vpop.permute.xlu0 %523 }
 0xa62   :  { %v526_v41 = vadd.f32 %v524_v40, %v473_v23 }
 0xa64   :  { %948 = vtanh.f32 %v526_v41 }
 0xa6a   :  { %v949_v42 = vpop.eup %948 }
 0xa6b   :  { %530 = vrot.lane.b32.xlu1 %v949_v42, %s1011_s6 }
 0xadd   :  { %v531_v44 = vpop.permute.xlu1 %530 }
 0xade   :  { %v533_v46 = vmul.f32 %v531_v44, %v528_v43 }
 0xae0   :  { %v535_v47 = vadd.f32 %v534_v45, %v533_v46 }
 0xae2   :  { %537 = vrot.lane.b32.xlu2 %v535_v47, %s1011_s6 }
 0xb3c   :  { %v538_v51 = vpop.permute.xlu2 %537 }
 0xb3d   :  { %541 = vst.msk [vmem:[#allocation5 + $0x4] sm:$0x1] %vm156_vm6, %v538_v51  ;;  %895 = vmatmul.msk.f32.vlgmr.msra.gmra.mxu3 %vm55_vm1, %v538_v51  ;;  %v905_v51 = vld [vmem:[%s1273_s2 + $0x7] sm:$0x1]  ;;  %s834_s2 = sshll.u32 %s1013_s1, 4  ;;  %s835_s2 = int_to_ptr.vmem [resolvable:$true] %s834_s2 }
 0xbc0   :  { %v590_v52 = vpop.f32.mrf.mxu3 }
 0xbc1   :  { %v591_v3 = vadd.f32 %v590_v52, %v1128_v8  ;;  %v739_v52 = vmul.f32 %v905_v51, %v736_v50 }
 0xbc3   :  { %614 = vrot.lane.b32.xlu0 %v591_v3, %s1009_s24  ;;  %v593_v54 = vadd.f32 %v591_v3, %v569_v4  ;;  %907 = vmatmul.msk.f32.vlgmr.msrb.gmra.mxu2 %vm55_vm1, %v739_v52 }
 0xbc5   :  { %v896_v55 = vmul.f32 -1.442695, %v593_v54 }
 0xbc7   :  { %950 = vpow2.f32 %v896_v55 }
 0xbcd   :  { %v951_v56 = vpop.eup %950 }
 0xbce   :  { %v597_v57 = vadd.f32 1.0, %v951_v56 }
 0xbd0   :  { %952 = vrcp.f32 %v597_v57  ;;  %v609_v61 = vand.u32 2147483648, %v597_v57  ;;  %vm603_vm10 = vweird.f32 %v597_v57  ;;  %v607_v62 = vand.u32 2147483647, %v597_v57 }
 0xbd2   :  { %v610_v2 = vor.u32 1.1754944e-38, %v609_v61  ;;  %vm608_vm12 = vcmp.eq.f32.partialorder %v607_v62, 8.507059e+37 }
 0xbd6   :  { %v953_v58 = vpop.eup %952 }
 0xbd7   :  { %v599_v0 = vmul.f32 %v953_v58, %v597_v57  ;;  %vm604_vm9 = vweird.f32 %v953_v58 }
 0xbd8   :  { %vm605_vm11 = vmor %vm603_vm10, %vm604_vm9 }
 0xbd9   :  { %v600_v59 = vsub.f32 1.0, %v599_v0 }
 0xbdb   :  { %v601_v1 = vmul.f32 %v953_v58, %v600_v59 }
 0xbdd   :  { %v602_v60 = vadd.f32 %v953_v58, %v601_v1 }
 0xbdf   :  { %v606_v63 = vsel %vm605_vm11, %v953_v58, %v602_v60 }
 0xbe0   :  { %v611_v6 = vsel %vm608_vm12, %v610_v2, %v606_v63 }
 0xbe1   :  { %v624_v13 = vsub.f32 1.0, %v611_v6  ;;  %v630_v15 = vmul.f32 %v611_v6, %v535_v47 }
 0xc35   :  { %v615_v5 = vpop.permute.xlu0 %614 }
 0xc36   :  { %v617_v7 = vmul.f32 %v615_v5, %v611_v6 }
 0xc38   :  { %619 = vrot.lane.b32.xlu1 %v617_v7, %s1010_s5 }
 0xc46   :  { %v760_v54 = vpop.f32.mrf.mxu2 }
 0xc47   :  { %v761_v55 = vadd.f32 %v760_v54, %v1135_v11 }
 0xcaa   :  { %v620_v9 = vpop.permute.xlu1 %619 }
 0xcab   :  { %v622_v10 = vadd.f32 %v620_v9, %v569_v4 }
 0xcad   :  { %954 = vtanh.f32 %v622_v10 }
 0xcb3   :  { %v955_v12 = vpop.eup %954 }
 0xcb4   :  { %626 = vrot.lane.b32.xlu2 %v955_v12, %s1011_s6 }
 0xd0e   :  { %v627_v14 = vpop.permute.xlu2 %626 }
 0xd0f   :  { %v629_v16 = vmul.f32 %v627_v14, %v624_v13 }
 0xd11   :  { %v631_v17 = vadd.f32 %v630_v15, %v629_v16 }
 0xd13   :  { %633 = vrot.lane.b32.xlu0 %v631_v17, %s1011_s6 }
 0xd85   :  { %v634_v21 = vpop.permute.xlu0 %633 }
 0xd86   :  { %637 = vst.msk [vmem:[#allocation5 + $0x5] sm:$0x1] %vm156_vm6, %v634_v21  ;;  %902 = vmatmul.msk.f32.vlgmr.msrb.gmra.mxu1 %vm55_vm1, %v634_v21 }
 0xe03   :  { %v686_v22 = vpop.f32.mrf.mxu1 }
 0xe04   :  { %v687_v23 = vadd.f32 %v686_v22, %v1128_v8 }
 0xe06   :  { %710 = vrot.lane.b32.xlu1 %v687_v23, %s1009_s24  ;;  %v689_v26 = vadd.f32 %v687_v23, %v665_v25 }
 0xe08   :  { %v903_v27 = vmul.f32 -1.442695, %v689_v26 }
 0xe0a   :  { %956 = vpow2.f32 %v903_v27 }
 0xe10   :  { %v957_v28 = vpop.eup %956 }
 0xe11   :  { %v693_v29 = vadd.f32 1.0, %v957_v28 }
 0xe13   :  { %958 = vrcp.f32 %v693_v29  ;;  %v705_v35 = vand.u32 2147483648, %v693_v29  ;;  %vm699_vm14 = vweird.f32 %v693_v29  ;;  %v703_v36 = vand.u32 2147483647, %v693_v29 }
 0xe15   :  { %v706_v38 = vor.u32 1.1754944e-38, %v705_v35  ;;  %vm704_vm0 = vcmp.eq.f32.partialorder %v703_v36, 8.507059e+37 }
 0xe19   :  { %v959_v30 = vpop.eup %958 }
 0xe1a   :  { %v695_v31 = vmul.f32 %v959_v30, %v693_v29  ;;  %vm700_vm13 = vweird.f32 %v959_v30 }
 0xe1b   :  { %vm701_vm15 = vmor %vm699_vm14, %vm700_vm13 }
 0xe1c   :  { %v696_v32 = vsub.f32 1.0, %v695_v31 }
 0xe1e   :  { %v697_v33 = vmul.f32 %v959_v30, %v696_v32 }
 0xe20   :  { %v698_v34 = vadd.f32 %v959_v30, %v697_v33 }
 0xe22   :  { %v702_v37 = vsel %vm701_vm15, %v959_v30, %v698_v34 }
 0xe23   :  { %v707_v40 = vsel %vm704_vm0, %v706_v38, %v702_v37 }
 0xe24   :  { %v720_v45 = vsub.f32 1.0, %v707_v40  ;;  %v726_v47 = vmul.f32 %v707_v40, %v631_v17 }
 0xe78   :  { %v711_v39 = vpop.permute.xlu1 %710 }
 0xe79   :  { %v713_v41 = vmul.f32 %v711_v39, %v707_v40 }
 0xe7b   :  { %715 = vrot.lane.b32.xlu2 %v713_v41, %s1010_s5 }
 0xed5   :  { %v716_v42 = vpop.permute.xlu2 %715 }
 0xed6   :  { %v718_v43 = vadd.f32 %v716_v42, %v665_v25 }
 0xed8   :  { %960 = vtanh.f32 %v718_v43 }
 0xede   :  { %v961_v44 = vpop.eup %960 }
 0xedf   :  { %722 = vrot.lane.b32.xlu0 %v961_v44, %s1011_s6 }
 0xf51   :  { %v723_v46 = vpop.permute.xlu0 %722 }
 0xf52   :  { %v725_v48 = vmul.f32 %v723_v46, %v720_v45 }
 0xf54   :  { %v727_v49 = vadd.f32 %v726_v47, %v725_v48 }
 0xf56   :  { %729 = vrot.lane.b32.xlu1 %v727_v49, %s1011_s6 }
 0xfc8   :  { %v730_v3 = vpop.permute.xlu1 %729 }
 0xfc9   :  { %733 = vst.msk [vmem:[#allocation5 + $0x6] sm:$0x1] %vm156_vm6, %v730_v3  ;;  %909 = vmatmul.msk.f32.vlgmr.msrb.gmra.mxu3 %vm55_vm1, %v730_v3 }
0x104c   :  { %v782_v53 = vpop.f32.mrf.mxu3 }
0x104d   :  { %v783_v4 = vadd.f32 %v782_v53, %v1128_v8 }
0x104f   :  { %806 = vrot.lane.b32.xlu2 %v783_v4, %s1009_s24  ;;  %v785_v56 = vadd.f32 %v783_v4, %v761_v55 }
0x1051   :  { %v910_v57 = vmul.f32 -1.442695, %v785_v56 }
0x1053   :  { %962 = vpow2.f32 %v910_v57 }
0x1059   :  { %v963_v58 = vpop.eup %962 }
0x105a   :  { %v789_v0 = vadd.f32 1.0, %v963_v58 }
0x105c   :  { %964 = vrcp.f32 %v789_v0  ;;  %v801_v63 = vand.u32 2147483648, %v789_v0  ;;  %vm795_vm2 = vweird.f32 %v789_v0  ;;  %v799_v8 = vand.u32 2147483647, %v789_v0 }
0x105e   :  { %v802_v5 = vor.u32 1.1754944e-38, %v801_v63  ;;  %vm800_vm4 = vcmp.eq.f32.partialorder %v799_v8, 8.507059e+37 }
0x1062   :  { %v965_v59 = vpop.eup %964 }
0x1063   :  { %v791_v1 = vmul.f32 %v965_v59, %v789_v0  ;;  %vm796_vm1 = vweird.f32 %v965_v59 }
0x1064   :  { %vm797_vm3 = vmor %vm795_vm2, %vm796_vm1 }
0x1065   :  { %v792_v60 = vsub.f32 1.0, %v791_v1 }
0x1067   :  { %v793_v61 = vmul.f32 %v965_v59, %v792_v60 }
0x1069   :  { %v794_v62 = vadd.f32 %v965_v59, %v793_v61 }
0x106b   :  { %v798_v2 = vsel %vm797_vm3, %v965_v59, %v794_v62 }
0x106c   :  { %v803_v6 = vsel %vm800_vm4, %v802_v5, %v798_v2 }
0x106d   :  { %v816_v13 = vsub.f32 1.0, %v803_v6  ;;  %v822_v15 = vmul.f32 %v803_v6, %v727_v49 }
0x10a9   :  { %v807_v11 = vpop.permute.xlu2 %806 }
0x10aa   :  { %v809_v7 = vmul.f32 %v807_v11, %v803_v6 }
0x10ac   :  { %811 = vrot.lane.b32.xlu0 %v809_v7, %s1010_s5  ;;  %s1014_s5 = smov 16  }
0x111e   :  { %v812_v9 = vpop.permute.xlu0 %811 }
0x111f   :  { %v814_v10 = vadd.f32 %v812_v9, %v761_v55 }
0x1121   :  { %966 = vtanh.f32 %v814_v10 }
0x1127   :  { %v967_v12 = vpop.eup %966 }
0x1128   :  { %818 = vrot.lane.b32.xlu1 %v967_v12, %s1011_s6 }
0x119a   :  { %v819_v14 = vpop.permute.xlu1 %818 }
0x119b   :  { %v821_v16 = vmul.f32 %v819_v14, %v816_v13 }
0x119d   :  { %v823_v17 = vadd.f32 %v822_v15, %v821_v16 }
0x119f   :  { %825 = vrot.lane.b32.xlu2 %v823_v17, %s1011_s6 }
0x11f9   :  { %v826_v18 = vpop.permute.xlu2 %825 }
0x11fa   :  { %829 = vst.msk [vmem:[#allocation5 + $0x7] sm:$0x1] %vm156_vm6, %v826_v18 }
0x11fb   :  { %842 = dma.vmem_to_hbm [thread:$0]  %s835_s2, 128, %s837_s22, [#allocation3], %s1014_s5, %s1014_s5, %s1015_s23  }
0x11fc   :  { %1006 = dma.done.wait [#allocation3], 128  }
0x11fd   :  { %1007 = vsyncadd [#allocation3], 4294967168 }
0x11fe   :  { %847 = vsyncpa [#allocation3], 1 }
0x11ff   :  { %848 = vsyncpa [#allocation4], 1 }

</bundles_post_ra>
